<compile_context>
chip_gen: v6e
topology: v6e:2x2x1
jax: 0.10.0
libtpu: 0.0.40
codegen_flags: <defaults>
</compile_context>

<pallas_src>
import jax
import jax.numpy as jnp
from jax.experimental import pallas as pl
from jax.experimental.pallas import tpu as pltpu


def _round_up(x: int, m: int) -> int:
    return ((x + m - 1) // m) * m


def _mlm_kernel(x_ref, w_ref, b_ref, o_ref):
    # x_ref : (tm, H)   bf16 VMEM
    # w_ref : (H, tn)   bf16 VMEM (resident across the inner M grid axis)
    # b_ref : (1, tn)   f32  VMEM
    # o_ref : (tm, tn)  out-dtype VMEM
    acc = jnp.dot(x_ref[...], w_ref[...], preferred_element_type=jnp.float32)
    o_ref[...] = (acc + b_ref[...]).astype(o_ref.dtype)


@jax.jit
def mlm_forward(x, w, b):
    """x: (B, S, H), w: (H, V), b: (V,)  ->  (B, S, V) in x.dtype."""
    B, S, H = x.shape
    V = w.shape[1]
    M = B * S
    out_dtype = x.dtype
    out_bytes = jnp.dtype(out_dtype).itemsize

    # ---- tile selection ----------------------------------------------------
    # Row tile: 256 amortizes per-step overhead and feeds the MXU; for tiny M
    # use a single padded tile (multiple of 8 sublanes).
    tm = 256 if M >= 256 else _round_up(M, 8)
    M_pad = _round_up(M, tm)

    # Vocab tile: lane-dense multiple of 128.  Start at 2048 and shrink until
    # the double-buffered working set (x tile + weight tile + bias + out tile)
    # fits comfortably under a 48 MiB VMEM budget (safe on v7x's 64 MiB too).
    vmem_budget = 48 * 1024 * 1024
    tn = min(2048, _round_up(V, 128))
    while tn > 128:
        working = 2 * (tm * H * 2 + H * tn * 2 + tn * 4 + tm * tn * out_bytes)
        if working <= vmem_budget:
            break
        tn -= 128
    V_pad = _round_up(V, tn)

    # ---- prepare padded, bf16 operands --------------------------------------
    x2d = x.reshape(M, H).astype(jnp.bfloat16)
    wb = w.astype(jnp.bfloat16)
    bf = b.astype(jnp.float32)
    if M_pad != M:
        x2d = jnp.pad(x2d, ((0, M_pad - M), (0, 0)))
    if V_pad != V:
        wb = jnp.pad(wb, ((0, 0), (0, V_pad - V)))
        bf = jnp.pad(bf, (0, V_pad - V))
    b2d = bf.reshape(1, V_pad)

    grid = (V_pad // tn, M_pad // tm)  # V outer, M innermost (weight reuse)

    bytes_accessed = (
        M_pad * H * 2            # x (bf16), read once
        + H * V_pad * 2          # w (bf16), streamed once
        + V_pad * 4              # bias (f32)
        + M_pad * V_pad * out_bytes  # output
    )
    cost = pl.CostEstimate(
        flops=2 * M_pad * H * V_pad,
        transcendentals=0,
        bytes_accessed=bytes_accessed,
    )

    out2d = pl.pallas_call(
        _mlm_kernel,
        out_shape=jax.ShapeDtypeStruct((M_pad, V_pad), out_dtype),
        grid_spec=pltpu.PrefetchScalarGridSpec(
            num_scalar_prefetch=0,
            grid=grid,
            in_specs=[
                pl.BlockSpec((tm, H), lambda j, i: (i, 0)),   # x tile
                pl.BlockSpec((H, tn), lambda j, i: (0, j)),   # weight tile
                pl.BlockSpec((1, tn), lambda j, i: (0, j)),   # bias tile
            ],
            out_specs=pl.BlockSpec((tm, tn), lambda j, i: (i, j)),
        ),
        compiler_params=pltpu.CompilerParams(
            dimension_semantics=("parallel", "parallel"),
            vmem_limit_bytes=vmem_budget,
        ),
        cost_estimate=cost,
    )(x2d, wb, b2d)

    return out2d[:M, :V].reshape(B, S, V)


def _check(batch, seq, hidden, vocab, key):
    kx, kw, kb = jax.random.split(key, 3)
    x = jax.random.normal(kx, (batch, seq, hidden), dtype=jnp.float32)

    # PyTorch Linear init: U(-1/sqrt(H), 1/sqrt(H)); weight stored as (H, V)
    # (transpose of PyTorch's (V, H) layout).
    bound = 1.0 / (hidden ** 0.5)
    w = jax.random.uniform(kw, (hidden, vocab), dtype=jnp.float32,
                           minval=-bound, maxval=bound)
    b = jax.random.uniform(kb, (vocab,), dtype=jnp.float32,
                           minval=-bound, maxval=bound)

    out = jax.block_until_ready(mlm_forward(x, w, b))

    # Reference matching the kernel's compute: bf16-rounded inputs, f32 accum.
    xr = x.astype(jnp.bfloat16).astype(jnp.float32)
    wr = w.astype(jnp.bfloat16).astype(jnp.float32)
    ref = jnp.einsum("bsh,hv->bsv", xr, wr) + b

    assert out.shape == (batch, seq, vocab)
    assert jnp.allclose(out, ref, atol=1e-2, rtol=1e-2), (
        float(jnp.max(jnp.abs(out - ref))))


if __name__ == "__main__":
    key = jax.random.PRNGKey(0)
    k1, k2 = jax.random.split(key)

    # Small shapes consistent with the module's forward signature.
    _check(batch=2, seq=8, hidden=32, vocab=64, key=k1)
    # Ragged shapes (exercise padding of both the token and vocab axes).
    _check(batch=3, seq=5, hidden=32, vocab=200, key=k2)

    print("KERNEL_OK")
</pallas_src>

<mosaic_0001>
module attributes {stable_mosaic.version = 11 : i64} {
  func.func @_mlm_kernel(%arg0: i32, %arg1: i32, %arg2: memref<16x32xbf16, #tpu.memory_space<vmem>>, %arg3: memref<32x128xbf16, #tpu.memory_space<vmem>>, %arg4: memref<1x128xf32, #tpu.memory_space<vmem>>, %arg5: memref<16x128xf32, #tpu.memory_space<vmem>>) attributes {dimension_semantics = [#tpu.dimension_semantics<parallel>, #tpu.dimension_semantics<parallel>], iteration_bounds = array<i64: 1, 1>, scalar_prefetch = 0 : i64, scratch_operands = 0 : i64, tpu.core_type = #tpu.core_type<tc>, window_params = [{transform_indices = @transform_0, window_bounds = array<i64: 16, 32>}, {transform_indices = @transform_1, window_bounds = array<i64: 32, 128>}, {transform_indices = @transform_2, window_bounds = array<i64: 1, 128>}, {transform_indices = @transform_3, window_bounds = array<i64: 16, 128>}]} {
    %c0 = arith.constant 0 : index
    %c0_0 = arith.constant 0 : index
    %0 = vector.load %arg2[%c0, %c0_0] : memref<16x32xbf16, #tpu.memory_space<vmem>>, vector<16x32xbf16>
    %c0_1 = arith.constant 0 : index
    %c0_2 = arith.constant 0 : index
    %1 = vector.load %arg3[%c0_1, %c0_2] : memref<32x128xbf16, #tpu.memory_space<vmem>>, vector<32x128xbf16>
    %cst = arith.constant dense<0.000000e+00> : vector<16x128xf32>
    %2 = tpu.matmul %0, %1, %cst {dimension_numbers = #tpu.dot_dimension_numbers<[1], [0], [0], [1], [0, 0, 1, 1], [], []>} : vector<16x32xbf16>, vector<32x128xbf16>, vector<16x128xf32> -> vector<16x128xf32>
    %c0_3 = arith.constant 0 : index
    %c0_4 = arith.constant 0 : index
    %3 = vector.load %arg4[%c0_3, %c0_4] : memref<1x128xf32, #tpu.memory_space<vmem>>, vector<1x128xf32>
    %4 = vector.broadcast %3 : vector<1x128xf32> to vector<16x128xf32>
    %5 = arith.addf %2, %4 : vector<16x128xf32>
    %c0_5 = arith.constant 0 : index
    %c0_6 = arith.constant 0 : index
    %6 = vector.load %arg5[%c0_5, %c0_6] : memref<16x128xf32, #tpu.memory_space<vmem>>, vector<16x128xf32>
    tpu.vector_store %arg5[%c0_5, %c0_6], %5 {strides = array<i32>} : memref<16x128xf32, #tpu.memory_space<vmem>>, vector<16x128xf32>,
    return
  }
  func.func @transform_0(%arg0: i32, %arg1: i32) -> (i32, i32) {
    %c0_i32 = arith.constant 0 : i32
    %c0_i32_0 = arith.constant 0 : i32
    return %arg1, %c0_i32 : i32, i32
  }
  func.func @transform_1(%arg0: i32, %arg1: i32) -> (i32, i32) {
    %c0_i32 = arith.constant 0 : i32
    %c0_i32_0 = arith.constant 0 : i32
    return %c0_i32, %arg0 : i32, i32
  }
  func.func @transform_2(%arg0: i32, %arg1: i32) -> (i32, i32) {
    %c0_i32 = arith.constant 0 : i32
    %c0_i32_0 = arith.constant 0 : i32
    return %c0_i32, %arg0 : i32, i32
  }
  func.func @transform_3(%arg0: i32, %arg1: i32) -> (i32, i32) {
    %c0_i32 = arith.constant 0 : i32
    return %arg1, %arg0 : i32, i32
  }
}

</mosaic_0001>

<bundles_post_ra>
// kernel: mlm_forward.1
= control target key start
LH: loop header
LB: loop body
LE: loop exit
PB: predicated region body
PF: predicated region fallthrough
CT: control target
= control target key end

     0   :  { %v117_v0 = vmov 0.0   ;;  %vm118_vm0 = vmmov 0   ;;  %vm45_vm1 = vcmask 261120   ;;  %s157_s1 = inlined_call_operand.vmem [shape: bf16[32,128], index: 1, kind: input, shape index: {}]   ;;  %s158_s0 = inlined_call_operand.vmem [shape: bf16[16,32], index: 0, kind: input, shape index: {}]   ;;  %s159_s2 = inlined_call_operand.vmem [shape: f32[1,128], index: 2, kind: input, shape index: {}]   ;;  %s160_s3 = inlined_call_operand.vmem [shape: f32[16,128], index: 3, kind: output, shape index: {}]  }
   0x1   :  { %104 = vmatprep.subr.bf16.mxu0 %v117_v0  ;;  %v114_v1 = vld [vmem:[%s157_s1 + $0x8] sm:$0xff]   ;;  %108 = vmatprep.mubr.msk.bf16.mxu0 %vm118_vm0, %v117_v0  ;;  %v115_v2 = vld [vmem:[%s157_s1] sm:$0xff]  }
   0x2   :  { %105 = vmatpush3.bf16.msra.mxu0 %v114_v1  ;;  %v116_v3 = vld [vmem:[%s158_s0] sm:$0xff]  }
   0x3   :  { %106 = vmatprep.subr.bf16.mxu0 %v117_v0  ;;  %v96_v4 = vld [vmem:[%s159_s2] ss:$0 sm:$0xff] }
   0x6   :  { %107 = vmatpush3.bf16.msra.mxu0 %v115_v2 }
   0x9   :  { %109 = vmatmul.mubr.msk.bf16.vlgmr.msra.gmra.mxu0 %vm45_vm1, %v116_v3 }
  0xc9   :  { %v83_v5 = vpop.f32.mrf.mxu0 }
  0xca   :  { %v84_v6 = vadd.f32 %v96_v4, %v83_v5 }
  0xcb   :  { %v110_v7 = vpop.f32.mrf.mxu0 }
  0xcc   :  { %90 = vst [vmem:[%s160_s3] sm:$0xff] %v84_v6 }
  0xcd   :  { %v86_v8 = vpop.f32.mrf.mxu0 }
  0xce   :  { %v87_v9 = vadd.f32 %v96_v4, %v86_v8 }
  0xcf   :  { %v111_v10 = vpop.f32.mrf.mxu0 }
  0xd0   :  { %91 = vst [vmem:[%s160_s3 + $0x8] sm:$0xff] %v87_v9 }

</bundles_post_ra>
